<compile_context>
chip_gen: v7x
topology: tpu7x:2x2x1
jax: 0.10.0
libtpu: 0.0.40
codegen_flags: <defaults>
</compile_context>

<pallas_src>
import functools

import jax
import jax.numpy as jnp
from jax.experimental import pallas as pl
from jax.experimental.pallas import tpu as pltpu


def _kv_gather_kernel(idx_ref, wgt_ref, *refs, topk: int, p2: int, soft: bool):
    # idx_ref: (n*p2*topk,) int32 in SMEM (scalar prefetch; drives kv index_maps)
    # wgt_ref: (n*p2*topk,) f32   in SMEM (scalar prefetch)
    # refs[:topk]: topk kv windows, each (1, 1, w2, c_kv), already routed via index_map
    # refs[topk]:  output slab (1, 1, topk, w2, c_kv) for query region (b, i)
    kv_refs = refs[:topk]
    out_ref = refs[topk]

    b = pl.program_id(0)
    i = pl.program_id(1)
    base = (b * p2 + i) * topk

    for t in range(topk):                     # static unroll over routed slots
        tile = kv_refs[t][0, 0]               # (w2, c_kv) lane-dense window
        if soft:
            tile = tile * wgt_ref[base + t]   # scalar (SMEM) broadcast multiply
        out_ref[0, 0, t] = tile.astype(out_ref.dtype)


def kv_gather(r_idx: jax.Array, r_weight: jax.Array, kv: jax.Array,
              *, mul_weight: str = "none") -> jax.Array:
    """Pallas implementation of KVGather.forward.

    Args:
      r_idx:    (n, p2, topk) integer routing indices into the p2 axis of kv.
      r_weight: (n, p2, topk) routing weights (used iff mul_weight == 'soft').
      kv:       (n, p2, w2, c_kv) key/value windows.
      mul_weight: 'none' | 'soft' | 'hard'.
    Returns:
      (n, p2, topk, w2, c_kv) gathered (and optionally weighted) kv.
    """
    assert mul_weight in ("none", "soft", "hard")
    if mul_weight == "hard":
        # TODO(synk): matches the PyTorch module, which also raises here.
        raise NotImplementedError("differentiable hard routing TBA")

    n, p2, w2, c_kv = kv.shape
    topk = r_idx.shape[-1]
    assert r_idx.shape == (n, p2, topk)
    assert r_weight.shape == (n, p2, topk)

    # Flatten routing scalars to 1-D for SMEM friendliness.
    idx_flat = r_idx.reshape(-1).astype(jnp.int32)
    wgt_flat = r_weight.reshape(-1).astype(jnp.float32)

    soft = (mul_weight == "soft")
    kernel = functools.partial(_kv_gather_kernel, topk=topk, p2=p2, soft=soft)

    # Data-dependent gather: the kv block index along the p2 axis for routed
    # slot t comes from the prefetched r_idx scalars (P2 pattern).
    def make_kv_map(t):
        def kv_map(b, i, idx_ref, wgt_ref):
            return (b, idx_ref[(b * p2 + i) * topk + t], 0, 0)
        return kv_map

    def out_map(b, i, idx_ref, wgt_ref):
        return (b, i, 0, 0, 0)

    in_specs = [pl.BlockSpec((1, 1, w2, c_kv), make_kv_map(t))
                for t in range(topk)]

    return pl.pallas_call(
        kernel,
        out_shape=jax.ShapeDtypeStruct((n, p2, topk, w2, c_kv), kv.dtype),
        grid_spec=pltpu.PrefetchScalarGridSpec(
            num_scalar_prefetch=2,                 # (r_idx, r_weight) -> SMEM
            grid=(n, p2),
            in_specs=in_specs,
            out_specs=pl.BlockSpec((1, 1, topk, w2, c_kv), out_map),
        ),
        compiler_params=pltpu.CompilerParams(
            dimension_semantics=("parallel", "parallel")),
    )(idx_flat, wgt_flat, *([kv] * topk))


def _reference(r_idx, r_weight, kv, mul_weight):
    # Pure-JAX reference mirroring the PyTorch gather.
    gathered = jax.vmap(lambda kv_b, idx_b: kv_b[idx_b])(kv, r_idx)  # (n,p2,k,w2,c)
    if mul_weight == "soft":
        gathered = r_weight[..., None, None] * gathered
    return gathered


if __name__ == "__main__":
    key = jax.random.PRNGKey(0)
    # Small shapes consistent with the module:
    #   n=2 batches, p^2=16 regions, w^2=16 tokens per window, c_kq+c_v=128, topk=4.
    n, p2, w2, c_kv, topk = 2, 16, 16, 128, 4
    k1, k2, k3 = jax.random.split(key, 3)

    kv = jax.random.normal(k1, (n, p2, w2, c_kv), dtype=jnp.float32)
    r_idx = jax.random.randint(k2, (n, p2, topk), 0, p2, dtype=jnp.int32)
    r_weight = jax.nn.softmax(
        jax.random.normal(k3, (n, p2, topk), dtype=jnp.float32), axis=-1)

    ok = True
    for mode in ("none", "soft"):
        out = kv_gather(r_idx, r_weight, kv, mul_weight=mode)
        out = jax.block_until_ready(out)
        ref = _reference(r_idx, r_weight, kv, mode)
        assert out.shape == (n, p2, topk, w2, c_kv)
        assert jnp.allclose(out, ref, atol=1e-6, rtol=1e-6), f"mismatch in mode={mode}"
        ok = ok and True

    if ok:
        print("KERNEL_OK")
</pallas_src>

<mosaic_0001>
module attributes {stable_mosaic.version = 11 : i64} {
  func.func @_kv_gather_kernel(%arg0: i32, %arg1: i32, %arg2: memref<128xi32, #tpu.memory_space<smem>>, %arg3: memref<128xf32, #tpu.memory_space<smem>>, %arg4: memref<1x1x16x128xf32, #tpu.memory_space<vmem>>, %arg5: memref<1x1x16x128xf32, #tpu.memory_space<vmem>>, %arg6: memref<1x1x16x128xf32, #tpu.memory_space<vmem>>, %arg7: memref<1x1x16x128xf32, #tpu.memory_space<vmem>>, %arg8: memref<1x1x4x16x128xf32, #tpu.memory_space<vmem>>) attributes {dimension_semantics = [#tpu.dimension_semantics<parallel>, #tpu.dimension_semantics<parallel>], iteration_bounds = array<i64: 2, 16>, scalar_prefetch = 2 : i64, scratch_operands = 0 : i64, tpu.core_type = #tpu.core_type<tc>, window_params = [{transform_indices = @transform_0, window_bounds = array<i64: 1, 1, 16, 128>}, {transform_indices = @transform_1, window_bounds = array<i64: 1, 1, 16, 128>}, {transform_indices = @transform_2, window_bounds = array<i64: 1, 1, 16, 128>}, {transform_indices = @transform_3, window_bounds = array<i64: 1, 1, 16, 128>}, {transform_indices = @transform_4, window_bounds = array<i64: 1, 1, 4, 16, 128>}]} {
    %c0 = arith.constant 0 : index
    %c0_0 = arith.constant 0 : index
    %c0_1 = arith.constant 0 : index
    %c0_2 = arith.constant 0 : index
    %0 = vector.load %arg4[%c0, %c0_0, %c0_1, %c0_2] : memref<1x1x16x128xf32, #tpu.memory_space<vmem>>, vector<1x1x16x128xf32>
    %1 = vector.shape_cast %0 : vector<1x1x16x128xf32> to vector<16x128xf32>
    %c0_3 = arith.constant 0 : index
    %c0_4 = arith.constant 0 : index
    %c0_5 = arith.constant 0 : index
    %c0_6 = arith.constant 0 : index
    %c0_7 = arith.constant 0 : index
    %2 = vector.load %arg8[%c0_3, %c0_4, %c0_5, %c0_6, %c0_7] : memref<1x1x4x16x128xf32, #tpu.memory_space<vmem>>, vector<1x1x1x16x128xf32>
    %3 = vector.shape_cast %2 : vector<1x1x1x16x128xf32> to vector<16x128xf32>
    %4 = vector.shape_cast %1 : vector<16x128xf32> to vector<1x1x1x16x128xf32>
    tpu.vector_store %arg8[%c0_3, %c0_4, %c0_5, %c0_6, %c0_7], %4 {strides = array<i32>} : memref<1x1x4x16x128xf32, #tpu.memory_space<vmem>>, vector<1x1x1x16x128xf32>,
    %c0_8 = arith.constant 0 : index
    %c0_9 = arith.constant 0 : index
    %c0_10 = arith.constant 0 : index
    %c0_11 = arith.constant 0 : index
    %5 = vector.load %arg5[%c0_8, %c0_9, %c0_10, %c0_11] : memref<1x1x16x128xf32, #tpu.memory_space<vmem>>, vector<1x1x16x128xf32>
    %6 = vector.shape_cast %5 : vector<1x1x16x128xf32> to vector<16x128xf32>
    %c0_12 = arith.constant 0 : index
    %c0_13 = arith.constant 0 : index
    %c1 = arith.constant 1 : index
    %c0_14 = arith.constant 0 : index
    %c0_15 = arith.constant 0 : index
    %7 = vector.load %arg8[%c0_12, %c0_13, %c1, %c0_14, %c0_15] : memref<1x1x4x16x128xf32, #tpu.memory_space<vmem>>, vector<1x1x1x16x128xf32>
    %8 = vector.shape_cast %7 : vector<1x1x1x16x128xf32> to vector<16x128xf32>
    %9 = vector.shape_cast %6 : vector<16x128xf32> to vector<1x1x1x16x128xf32>
    tpu.vector_store %arg8[%c0_12, %c0_13, %c1, %c0_14, %c0_15], %9 {strides = array<i32>} : memref<1x1x4x16x128xf32, #tpu.memory_space<vmem>>, vector<1x1x1x16x128xf32>,
    %c0_16 = arith.constant 0 : index
    %c0_17 = arith.constant 0 : index
    %c0_18 = arith.constant 0 : index
    %c0_19 = arith.constant 0 : index
    %10 = vector.load %arg6[%c0_16, %c0_17, %c0_18, %c0_19] : memref<1x1x16x128xf32, #tpu.memory_space<vmem>>, vector<1x1x16x128xf32>
    %11 = vector.shape_cast %10 : vector<1x1x16x128xf32> to vector<16x128xf32>
    %c0_20 = arith.constant 0 : index
    %c0_21 = arith.constant 0 : index
    %c2 = arith.constant 2 : index
    %c0_22 = arith.constant 0 : index
    %c0_23 = arith.constant 0 : index
    %12 = vector.load %arg8[%c0_20, %c0_21, %c2, %c0_22, %c0_23] : memref<1x1x4x16x128xf32, #tpu.memory_space<vmem>>, vector<1x1x1x16x128xf32>
    %13 = vector.shape_cast %12 : vector<1x1x1x16x128xf32> to vector<16x128xf32>
    %14 = vector.shape_cast %11 : vector<16x128xf32> to vector<1x1x1x16x128xf32>
    tpu.vector_store %arg8[%c0_20, %c0_21, %c2, %c0_22, %c0_23], %14 {strides = array<i32>} : memref<1x1x4x16x128xf32, #tpu.memory_space<vmem>>, vector<1x1x1x16x128xf32>,
    %c0_24 = arith.constant 0 : index
    %c0_25 = arith.constant 0 : index
    %c0_26 = arith.constant 0 : index
    %c0_27 = arith.constant 0 : index
    %15 = vector.load %arg7[%c0_24, %c0_25, %c0_26, %c0_27] : memref<1x1x16x128xf32, #tpu.memory_space<vmem>>, vector<1x1x16x128xf32>
    %16 = vector.shape_cast %15 : vector<1x1x16x128xf32> to vector<16x128xf32>
    %c0_28 = arith.constant 0 : index
    %c0_29 = arith.constant 0 : index
    %c3 = arith.constant 3 : index
    %c0_30 = arith.constant 0 : index
    %c0_31 = arith.constant 0 : index
    %17 = vector.load %arg8[%c0_28, %c0_29, %c3, %c0_30, %c0_31] : memref<1x1x4x16x128xf32, #tpu.memory_space<vmem>>, vector<1x1x1x16x128xf32>
    %18 = vector.shape_cast %17 : vector<1x1x1x16x128xf32> to vector<16x128xf32>
    %19 = vector.shape_cast %16 : vector<16x128xf32> to vector<1x1x1x16x128xf32>
    tpu.vector_store %arg8[%c0_28, %c0_29, %c3, %c0_30, %c0_31], %19 {strides = array<i32>} : memref<1x1x4x16x128xf32, #tpu.memory_space<vmem>>, vector<1x1x1x16x128xf32>,
    return
  }
  func.func @transform_0(%arg0: i32, %arg1: i32, %arg2: memref<128xi32, #tpu.memory_space<smem>>, %arg3: memref<128xf32, #tpu.memory_space<smem>>) -> (i32, i32, i32, i32) {
    %c16_i32 = arith.constant 16 : i32
    %0 = arith.muli %arg0, %c16_i32 : i32
    %1 = arith.addi %0, %arg1 : i32
    %c4_i32 = arith.constant 4 : i32
    %2 = arith.muli %1, %c4_i32 : i32
    %c0_i32 = arith.constant 0 : i32
    %3 = arith.addi %2, %c0_i32 : i32
    %4 = arith.index_cast %3 : i32 to index
    %5 = memref.load %arg2[%4] : memref<128xi32, #tpu.memory_space<smem>>
    %c0_i32_0 = arith.constant 0 : i32
    %c0_i32_1 = arith.constant 0 : i32
    %c0_i32_2 = arith.constant 0 : i32
    return %arg0, %5, %c0_i32_0, %c0_i32_1 : i32, i32, i32, i32
  }
  func.func @transform_1(%arg0: i32, %arg1: i32, %arg2: memref<128xi32, #tpu.memory_space<smem>>, %arg3: memref<128xf32, #tpu.memory_space<smem>>) -> (i32, i32, i32, i32) {
    %c16_i32 = arith.constant 16 : i32
    %0 = arith.muli %arg0, %c16_i32 : i32
    %1 = arith.addi %0, %arg1 : i32
    %c4_i32 = arith.constant 4 : i32
    %2 = arith.muli %1, %c4_i32 : i32
    %c1_i32 = arith.constant 1 : i32
    %3 = arith.addi %2, %c1_i32 : i32
    %4 = arith.index_cast %3 : i32 to index
    %5 = memref.load %arg2[%4] : memref<128xi32, #tpu.memory_space<smem>>
    %c0_i32 = arith.constant 0 : i32
    %c0_i32_0 = arith.constant 0 : i32
    %c0_i32_1 = arith.constant 0 : i32
    return %arg0, %5, %c0_i32, %c0_i32_0 : i32, i32, i32, i32
  }
  func.func @transform_2(%arg0: i32, %arg1: i32, %arg2: memref<128xi32, #tpu.memory_space<smem>>, %arg3: memref<128xf32, #tpu.memory_space<smem>>) -> (i32, i32, i32, i32) {
    %c16_i32 = arith.constant 16 : i32
    %0 = arith.muli %arg0, %c16_i32 : i32
    %1 = arith.addi %0, %arg1 : i32
    %c4_i32 = arith.constant 4 : i32
    %2 = arith.muli %1, %c4_i32 : i32
    %c2_i32 = arith.constant 2 : i32
    %3 = arith.addi %2, %c2_i32 : i32
    %4 = arith.index_cast %3 : i32 to index
    %5 = memref.load %arg2[%4] : memref<128xi32, #tpu.memory_space<smem>>
    %c0_i32 = arith.constant 0 : i32
    %c0_i32_0 = arith.constant 0 : i32
    %c0_i32_1 = arith.constant 0 : i32
    return %arg0, %5, %c0_i32, %c0_i32_0 : i32, i32, i32, i32
  }
  func.func @transform_3(%arg0: i32, %arg1: i32, %arg2: memref<128xi32, #tpu.memory_space<smem>>, %arg3: memref<128xf32, #tpu.memory_space<smem>>) -> (i32, i32, i32, i32) {
    %c16_i32 = arith.constant 16 : i32
    %0 = arith.muli %arg0, %c16_i32 : i32
    %1 = arith.addi %0, %arg1 : i32
    %c4_i32 = arith.constant 4 : i32
    %2 = arith.muli %1, %c4_i32 : i32
    %c3_i32 = arith.constant 3 : i32
    %3 = arith.addi %2, %c3_i32 : i32
    %4 = arith.index_cast %3 : i32 to index
    %5 = memref.load %arg2[%4] : memref<128xi32, #tpu.memory_space<smem>>
    %c0_i32 = arith.constant 0 : i32
    %c0_i32_0 = arith.constant 0 : i32
    %c0_i32_1 = arith.constant 0 : i32
    return %arg0, %5, %c0_i32, %c0_i32_0 : i32, i32, i32, i32
  }
  func.func @transform_4(%arg0: i32, %arg1: i32, %arg2: memref<128xi32, #tpu.memory_space<smem>>, %arg3: memref<128xf32, #tpu.memory_space<smem>>) -> (i32, i32, i32, i32, i32) {
    %c0_i32 = arith.constant 0 : i32
    %c0_i32_0 = arith.constant 0 : i32
    %c0_i32_1 = arith.constant 0 : i32
    %c0_i32_2 = arith.constant 0 : i32
    return %arg0, %arg1, %c0_i32, %c0_i32_0, %c0_i32_1 : i32, i32, i32, i32, i32
  }
}

</mosaic_0001>

<bundles_post_ra>
// kernel: tpu_custom_call.1
= control target key start
LH: loop header
LB: loop body
LE: loop exit
PB: predicated region body
PF: predicated region fallthrough
CT: control target
= control target key end

     0   :  { %s1986_s0 = inlined_call_operand.hbm [shape: s32[128], index: 0, kind: input, shape index: {}]   ;;  %s1987_s2 = inlined_call_operand.hbm [shape: f32[2,16,16,128], index: 2, kind: input, shape index: {}]   ;;  %s1988_s3 = inlined_call_operand.hbm [shape: f32[2,16,16,128], index: 3, kind: input, shape index: {}]   ;;  %s1989_s4 = inlined_call_operand.hbm [shape: f32[2,16,16,128], index: 4, kind: input, shape index: {}]   ;;  %s1990_s5 = inlined_call_operand.hbm [shape: f32[2,16,16,128], index: 5, kind: input, shape index: {}]   ;;  %s1991_s6 = inlined_call_operand.hbm [shape: f32[2,16,4,16,128], index: 6, kind: output, shape index: {}]   ;;  %s1992_s1 = inlined_call_operand.vmem [shape: f32[128], index: 1, kind: input, shape index: {}]  }
   0x1   :  { %2033 = sst [smem:[#allocation53_spill]] %s1987_s2  ;;  %s922_s23 = scalar_lea.hbm %s1986_s0, 16 }
   0x2   :  { %2034 = sst [smem:[#allocation54_spill]] %s1988_s3  ;;  %p923_p0 = scmp.ne.s32.totalorder %s1986_s0, %s922_s23 }
   0x3   :  { %2035 = sst [smem:[#allocation55_spill]] %s1989_s4  ;;  %p926_p1 = scmp.lt.u32.totalorder %s922_s23, %s1986_s0 }
   0x4   :  { %2036 = sst [smem:[#allocation56_spill]] %s1990_s5 }
   0x5   :  { %2037 = sst [smem:[#allocation57_spill]] %s1991_s6  ;;  %p928_p2 = pnand %p926_p1, %p923_p0 }
   0x7   :  { %931 = shalt.err (!%p928_p2)  }
   0x8   :  { %s1274_s28 = smov [#allocation3]   ;;  %s13_s9 = sshll.u32 %s1992_s1, 4  ;;  %s14_s9 = int_to_ptr.vmem [resolvable:$true] %s13_s9 }
   0x9   :  { %12 = dma.hbm_to_smem %s1986_s0, 16, %s1274_s28, [#allocation2] }
   0xa   :  { %s932_s10 = scalar_lea.vmem %s14_s9, 16  ;;  %p937_p4 = scmp.lt.s32.totalorder %s14_s9, %s14_s9 }
   0xb   :  { %p933_p3 = scmp.ne.s32.totalorder %s14_s9, %s932_s10  ;;  %p938_p5 = scmp.lt.s32.totalorder %s932_s10, %s932_s10 }
   0xd   :  { %p939_p6 = por %p938_p5, %p937_p4 }
   0xf   :  { %p940_p7 = pnand %p939_p6, %p933_p3 }
  0x11   :  { %943 = shalt.err (!%p940_p7)  }
  0x12   :  { %s1275_s11 = smov [#allocation4]  }
  0x13   :  { %16 = dma.vmem_to_smem %s14_s9, 16, %s1275_s11, [#allocation2] }
  0x14   :  { %1172 = dma.done.wait [#allocation2], 32 }
  0x15   :  { %1173 = vsyncadd [#allocation2], 4294967264 }
  0x16   :  { %18 = sfence }
  0x17   :  { %19 = vsyncpa [#allocation6], 0 }
  0x18   :  { %21 = vsyncpa [#allocation6 + $0x1], 0 }
  0x19   :  { %22 = vsyncpa [#allocation9], 0 }
  0x1a   :  { %24 = vsyncpa [#allocation9 + $0x1], 0 }
  0x1b   :  { %25 = vsyncpa [#allocation12], 0 }
  0x1c   :  { %27 = vsyncpa [#allocation12 + $0x1], 0 }
  0x1d   :  { %28 = vsyncpa [#allocation7], 0 }
  0x1e   :  { %30 = vsyncpa [#allocation7 + $0x1], 0  ;;  %s1335_s0 = smov 0   ;;  %s1337_s1 = smov 0  }
  0x1f   :  { %s1339_s12 = smov 0   ;;  %s1341_s13 = smov 0  }
  0x20   :  { %s1343_s14 = smov 0   ;;  %s1345_s15 = smov 0  }
  0x21   :  { %s1347_s16 = smov 0   ;;  %s1349_s17 = smov 0  }
  0x22   :  { %s1351_s18 = smov 0   ;;  %s1353_s19 = smov 0  }
  0x23   :  { %s1355_s20 = smov 0   ;;  %s1357_s21 = smov 0  }
  0x24   :  { %s1359_s22 = smov 0   ;;  %s1361_s23 = smov 0  }
  0x25   :  { %s1363_s24 = smov 0   ;;  %s1365_s25 = smov 0  }
  0x26   :  { %s1367_s26 = smov 0   ;;  %s1369_s27 = smov 0  }
  0x27   :  { %s1371_s28 = smov 0   ;;  %s1373_s29 = smov 0  }
  0x28 LB: > { %2038 = sst [smem:[#allocation28_spill]] %s1196_s0  ;;  %s1436_s30 = sadd.s32 4294967295, %s1272_s29   ;;  %s1272_s29 = sphi %s1373_s29, %s36_s29   ;;  %s1268_s28 = sphi %s1371_s28, %s2156_s28   ;;  %s1264_s27 = sphi %s1369_s27, %s2145_s27   ;;  %s1260_s26 = sphi %s1367_s26, %s2155_s26   ;;  %s1256_s25 = sphi %s1365_s25, %s2143_s25   ;;  %s1252_s24 = sphi %s1363_s24, %s2142_s24   ;;  %s1248_s23 = sphi %s1361_s23, %s2154_s23   ;;  %s1244_s22 = sphi %s1359_s22, %s2153_s22   ;;  %s1240_s21 = sphi %s1357_s21, %s2140_s21   ;;  %s1236_s20 = sphi %s1355_s20, %s2152_s20   ;;  %s1232_s19 = sphi %s1353_s19, %s2151_s19   ;;  %s1228_s18 = sphi %s1351_s18, %s2150_s18   ;;  %s1224_s17 = sphi %s1349_s17, %s2137_s17   ;;  %s1220_s16 = sphi %s1347_s16, %s2149_s16   ;;  %s1216_s15 = sphi %s1345_s15, %s2148_s15   ;;  %s1212_s14 = sphi %s1343_s14, %s2135_s14   ;;  %s1208_s13 = sphi %s1341_s13, %s2134_s13   ;;  %s1204_s12 = sphi %s1339_s12, %s2133_s12   ;;  %s1200_s1 = sphi %s1337_s1, %s2132_s1   ;;  %s1196_s0 = sphi %s1335_s0, %s2131_s0  }
  0x29   : > { %2039 = sst [smem:[#allocation29_spill]] %s1200_s1  ;;  %s45_s8 = sadd.s32 1, %s1264_s27 }
  0x2a   : > { %2040 = sst [smem:[#allocation30_spill]] %s1204_s12  ;;  %s48_s9 = sadd.s32 1, %s1268_s28 }
  0x2b   : > { %2041 = sst [smem:[#allocation31_spill]] %s1208_s13  ;;  %p46_p8 = scmp.ge.s32.totalorder %s45_s8, 16 }
  0x2c   : > { %2042 = sst [smem:[#allocation32_spill]] %s1212_s14  ;;  %s651_s10 = sshll.u32 %s1268_s28, 4 }
  0x2d   : > { %2043 = sst [smem:[#allocation33_spill]] %s1216_s15  ;;  %s53_s11 = sadd.s32 %s1264_s27, %s651_s10 }
  0x2e   : > { %2044 = sst [smem:[#allocation34_spill]] %s1224_s17  ;;  %p2016_p9 = scmp.eq.s32.totalorder %s1272_s29, 0 }
  0x2f   : > { %2045 = sst [smem:[#allocation35_spill]] %s1228_s18  ;;  %s2158_s8 = smov (%p46_p8, %s45_s8), 0 }
  0x30   : > { %2046 = sst [smem:[#allocation36_spill]] %s1240_s21  ;;  %s2160_s9 = smov (!%p46_p8, %s48_s9), %s1268_s28 }
  0x31   : > { %2047 = sst [smem:[#allocation37_spill]] %s1252_s24  ;;  %s1447_s6 = sshll.u32 %s53_s11, 2 }
  0x32   : > { %2048 = sst [smem:[#allocation38_spill]] %s1256_s25  ;;  %p2015_p10 = scmp.eq.s32.totalorder %s1436_s30, 0 }
  0x33   : > { %2049 = sst [smem:[#allocation39_spill]] %s1260_s26  ;;  %p50_p11 = scmp.ge.s32.totalorder %s2160_s9, 2 }
  0x34   : > { %2050 = sst [smem:[#allocation40_spill]] %s1264_s27  ;;  %s1997_s10 = sadd.s32 1, %s1447_s6 }
  0x35   : > { %2051 = sst [smem:[#allocation41_spill]] %s1268_s28  ;;  %s2162_s9 = smov (%p50_p11, %s2160_s9), 0 }
  0x36   : > { %2052 = sst [smem:[#allocation42_spill]] %s2158_s8  ;;  %p110_p12 = scmp.ne.s32.totalorder %s1240_s21, %s1236_s20 }
  0x37   : > { %s1451_s7 = sld [smem:[#allocation3 + %s1447_s6]]  ;;  %s653_s25 = sshll.u32 %s2162_s9, 4 }
  0x38   : > { %2053 = sst [smem:[#allocation43_spill]] %s2162_s9  ;;  %s1464_s5 = ssub.s32 %s1268_s28, %s2162_s9 }
  0x39   : > { %s92_s11 = sld [smem:[#allocation3 + %s1997_s10]]  ;;  %s57_s4 = sadd.s32 %s653_s25, %s2158_s8 }
  0x3a   : > { %2054 = sst [smem:[#allocation44_spill]] %s1464_s5  ;;  %p1469_p13 = por %p110_p12, %p2016_p9 }
  0x3b   : > { %s1473_s13 = sshll.u32 %s57_s4, 2  ;;  %p116_p0 = scmp.ne.s32.totalorder %s1236_s20, %s1232_s19 }
  0x3c   : > { %s96_s10 = sadd.s32 1, %s1473_s13  ;;  %s203_s15 = ssub.s32 %s1264_s27, %s2158_s8 }
  0x3d   : > { %s97_s14 = sld [smem:[#allocation3 + %s96_s10]]  ;;  %p1482_p1 = por %p116_p0, %p2015_p10 }
  0x3e   : > { %s204_s25 = sor.u32 %s203_s15, %s1464_s5  ;;  %s207_s2 = sadd.s32 1, %s1204_s12 }
  0x3f   : > { %s2056_s9 = scalar_select %p1482_p1, 1, 0 }
  0x40   : > { %p205_p2 = scmp.eq.s32.totalorder %s204_s25, 0  ;;  %p217_p3 = scmp.ne.s32.totalorder %s1204_s12, %s1200_s1 }
  0x41   : > { %2057 = sst [smem:[#allocation45_spill]] %s2056_s9  ;;  %p218_p4 = scmp.eq.s32.totalorder %s1436_s30, 31 }
  0x42   : > { %p223_p5 = scmp.ne.s32.totalorder %s1200_s1, %s1196_s0  ;;  %s2061_s15 = sadd.s32 4294967294, %s1272_s29  }
  0x43   : > { %s1494_s4 = scalar_select %p205_p2, %s1204_s12, %s207_s2  }
  0x44   : > { %p1496_p6 = por %p218_p4, %p217_p3  ;;  %p224_p7 = scmp.eq.s32.totalorder %s2061_s15, 31 }
  0x45   : > { %2058 = sst [smem:[#allocation46_spill]] %s1494_s4  ;;  %s99_s10 = ssub.s32 %s92_s11, %s97_s14 }
  0x46   : > { %s2059_s19 = scalar_select %p1496_p6, 1, 0 }
  0x47   : > { %s100_s25 = sor.u32 %s99_s10, %s1464_s5  ;;  %p1503_p8 = por %p224_p7, %p223_p5 }
  0x48   : > { %2060 = sst [smem:[#allocation47_spill]] %s2059_s19  ;;  %p101_p11 = scmp.eq.s32.totalorder %s100_s25, 0 }
  0x49   : > { %s2062_s8 = scalar_select %p1503_p8, 1, 0 }
  0x4a   : > { %p2014_p12 = scmp.lt.s32.totalorder %s1272_s29, 32  ;;  %s1509_s2 = sshll.u32 %s1268_s28, 5 }
  0x4b   : > { %2063 = sst [smem:[#allocation48_spill]] %s2062_s8  ;;  %s2064_s27 = sadd.s32 1, %s1240_s21 }
  0x4c   : > { %s1514_s4 = scalar_select %p101_p11, %s1240_s21, %s2064_s27  }
  0x4d   : > { %s271_s12 = sand.u32 1, %s1272_s29   ;;  %s273_s0 = sand.u32 1, %s1240_s21  }
  0x4e   : > { %2065 = sst [smem:[#allocation49_spill]] %s1514_s4  ;;  %s675_s19 = sshll.u32 %s273_s0, 4 }
  0x4f   : > { %p1522_p0 = pnand %p2014_p12, %p1469_p13  ;;  %p693_p2 = scmp.ge.s32.totalorder %s1272_s29, 1 }
  0x50   : > { %s714_s11 = scalar_select %p1469_p13, [#allocation3], [#allocation15] }
  0x51   : > { %s2067_s15 = sadd.s32 1, %s1447_s6  ;;  %s275_s0 = scalar_lea.vmem [#allocation8], %s675_s19 }
  0x52   : > { %s2164_s15 = smov (!%p1469_p13, %s2067_s15), 0  ;;  %s2166_s11 = smov (!%p2014_p12, %s714_s11), [#allocation19] }
  0x53   : > { %s2168_s15 = smov (!%p2014_p12, %s2164_s15), 0  ;;  %s289_s27 = sshll.u32 %s275_s0, 4  ;;  %s1537_s27 = int_to_ptr.vmem [resolvable:$true] %s289_s27 }
  0x54   : > { %s280_s10 = sld [smem:[%s2166_s11 + %s2168_s15]]  ;;  %p353_p3 = scmp.lt.s32.totalorder %s1272_s29, 33 }
  0x55   : > { %s1546_s21 = sld [smem:[#allocation3 + %s1473_s13]]  ;;  %s65_s19 = sadd.s32 1, %s1252_s24 }
  0x56   : > { %p1540_p4 = pnand %p693_p2, %p353_p3  ;;  %s2069_s3 = sld [smem:[#allocation54_spill]] }
  0x57   : > { %s1554_s11 = scalar_lea.sflag [#allocation9], %s271_s12  ;;  %p946_p5 = pneg %p1522_p0 }
  0x58   : > { %s2068_s25 = scalar_select %p1540_p4, 1, 0 }
  0x5a   : > { %s678_s28 = sshll.u32 %s280_s10, 1 }
  0x5b   : > { %s286_s4 = sadd.s32 %s678_s28, %s1509_s2 }
  0x5c   : > { %s680_s26 = sshll.u32 %s286_s4, 7  ;;  %s949_s1 = scalar_lea.hbm %s2069_s3, 8192 }
  0x5d   : > { %s1551_s9 = scalar_lea.hbm %s2069_s3, %s680_s26 }
  0x5e   : > { %s944_s15 = scalar_lea.hbm %s1551_s9, 256  ;;  %p950_p2 = scmp.lt.u32.totalorder %s1551_s9, %s2069_s3 }
  0x5f   : > { %p945_p13 = scmp.ne.s32.totalorder %s1551_s9, %s944_s15  ;;  %p951_p3 = scmp.lt.u32.totalorder %s949_s1, %s944_s15 }
  0x60   : > { %p953_p10 = scmp.lt.u32.totalorder %s944_s15, %s1551_s9 }
  0x61   : > { %p947_p7 = pnand %p946_p5, %p945_p13  ;;  %p952_p12 = por %p951_p3, %p950_p2 }
  0x63   : > { %p948_p11 = pneg %p947_p7  ;;  %p954_p9 = por %p953_p10, %p952_p12 }
  0x65   : > { %p955_p8 = pnand %p954_p9, %p948_p11 }
  0x67   : > { %958 = shalt.err (!%p955_p8)
}
  0x68   : > { %s959_s12 = scalar_lea.vmem %s1537_s27, 256  ;;  %s1276_s10 = smov [#allocation8]  }
  0x69   : > { %p960_p13 = scmp.ne.s32.totalorder %s1537_s27, %s959_s12  ;;  %s964_s26 = sshll.u32 %s1276_s10, 4  ;;  %s965_s26 = int_to_ptr.vmem [resolvable:$false] %s964_s26 }
  0x6a   : > { %s966_s28 = scalar_lea.vmem %s965_s26, 512  ;;  %p967_p1 = scmp.lt.s32.totalorder %s1537_s27, %s965_s26 }
  0x6b   : > { %p962_p7 = pnand %p960_p13, %p946_p5  ;;  %p968_p2 = scmp.lt.s32.totalorder %s966_s28, %s959_s12 }
  0x6d   : > { %p963_p6 = pneg %p962_p7  ;;  %p969_p3 = por %p968_p2, %p967_p1 }
  0x6f   : > { %p970_p10 = pnand %p969_p3, %p963_p6 }
  0x71   : > { %973 = shalt.err (!%p970_p10)
}
  0x72   : > { %s2019_s15 = smov 128   ;;  %s2021_s4 = smov 8  }
  0x73   : > { %739 = dma.hbm_to_vmem [thread:$0]  (!%p1522_p0), %s1551_s9, 256, %s1537_s27, %s1554_s11, %s2019_s15, %s2019_s15, %s2021_s4  }
  0x74   : > { %p72_p9 = scmp.ne.s32.totalorder %s1252_s24, %s1248_s23  ;;  %p78_p1 = scmp.ne.s32.totalorder %s1248_s23, %s1244_s22 }
  0x75   : > { %s244_s1 = sand.u32 1, %s1252_s24   ;;  %p2070_p6 = scmp.eq.s32.totalorder %s1272_s29, 0 }
  0x76   : > { %p2072_p12 = scmp.eq.s32.totalorder %s1436_s30, 0  ;;  %s61_s9 = ssub.s32 %s1451_s7, %s1546_s21 }
  0x77   : > { %p1592_p8 = por %p2070_p6, %p72_p9  ;;  %s62_s27 = sor.u32 %s61_s9, %s1464_s5 }
  0x78   : > { %p1598_p5 = por %p2072_p12, %p78_p1  ;;  %s669_s22 = sshll.u32 %s244_s1, 4 }
  0x79   : > { %p63_p0 = scmp.eq.s32.totalorder %s62_s27, 0  ;;  %p2075_p11 = scmp.lt.s32.totalorder %s1272_s29, 32 }
  0x7a   : > { %s2073_s14 = scalar_select %p1598_p5, 1, 0 }
  0x7b   : > { %s711_s0 = scalar_select %p1592_p8, [#allocation3], [#allocation14] }
  0x7c   : > { %s1610_s12 = scalar_select %p63_p0, %s1252_s24, %s65_s19  }
  0x7d   : > { %s712_s10 = scalar_select %p1592_p8, %s1447_s6, 0 }
  0x7e   : > { %2074 = sst [smem:[#allocation50_spill]] %s1610_s12  ;;  %s2170_s0 = smov (!%p2075_p11, %s711_s0), [#allocation18] }
  0x7f   : > { %p2076_p13 = pmov %p2075_p11  ;;  %s248_s21 = scalar_lea.vmem [#allocation5], %s669_s22 }
  0x80   : > { %s261_s7 = sshll.u32 %s248_s21, 4  ;;  %p2077_p7 = pmov %p2075_p11  ;;  %s1627_s7 = int_to_ptr.vmem [resolvable:$true] %s261_s7 }
  0x81   : > { %s2172_s10 = smov (!%p2076_p13, %s712_s10), 0  ;;  %s2024_s28 = sadd.s32 2, %s1447_s6 }
  0x82   : > { %p1623_p2 = pnand %p2077_p7, %p1592_p8  ;;  %s252_s19 = sld [smem:[%s2170_s0 + %s2172_s10]] }
  0x83   : > { %s134_s9 = sadd.s32 2, %s1473_s13  ;;  %s1633_s27 = sld [smem:[#allocation3 + %s2024_s28]] }
  0x84   : > { %s1635_s15 = sld [smem:[#allocation3 + %s134_s9]]  ;;  %s141_s21 = sadd.s32 1, %s1228_s18 }
  0x85   : > { %p148_p3 = scmp.ne.s32.totalorder %s1228_s18, %s1224_s17  ;;  %s2079_s0 = sld [smem:[#allocation53_spill]] }
  0x86   : > { %p2081_p9 = pmov %p2070_p6  ;;  %p976_p8 = pneg %p1623_p2 }
  0x88   : > { %s672_s22 = sshll.u32 %s252_s19, 1  ;;  %p1650_p1 = por %p148_p3, %p2081_p9 }
  0x89   : > { %s258_s8 = sadd.s32 %s1509_s2, %s672_s22  ;;  %s1654_s19 = scalar_lea.sflag [#allocation6], %s244_s1 }
  0x8a   : > { %s674_s4 = sshll.u32 %s258_s8, 7 }
  0x8b   : > { %s2080_s10 = smov %s2079_s0  ;;  %s1646_s24 = scalar_lea.hbm %s2079_s0, %s674_s4 }
  0x8c   : > { %s974_s9 = scalar_lea.hbm %s1646_s24, 256  ;;  %s979_s12 = scalar_lea.hbm %s2080_s10, 8192 }
  0x8d   : > { %p975_p6 = scmp.ne.s32.totalorder %s1646_s24, %s974_s9  ;;  %p980_p11 = scmp.lt.u32.totalorder %s1646_s24, %s2080_s10 }
  0x8e   : > { %p981_p13 = scmp.lt.u32.totalorder %s979_s12, %s974_s9  ;;  %p983_p3 = scmp.lt.u32.totalorder %s974_s9, %s1646_s24 }
  0x8f   : > { %p977_p12 = pnand %p976_p8, %p975_p6 }
  0x90   : > { %p982_p7 = por %p981_p13, %p980_p11 }
  0x91   : > { %p978_p0 = pneg %p977_p12 }
  0x92   : > { %p984_p9 = por %p983_p3, %p982_p7 }
  0x94   : > { %p985_p10 = pnand %p984_p9, %p978_p0 }
  0x96   : > { %988 = shalt.err (!%p985_p10)
}
  0x97   : > { %s989_s1 = scalar_lea.vmem %s1627_s7, 256  ;;  %s1279_s0 = smov [#allocation5]  }
  0x98   : > { %p990_p6 = scmp.ne.s32.totalorder %s1627_s7, %s989_s1  ;;  %s994_s3 = sshll.u32 %s1279_s0, 4  ;;  %s995_s3 = int_to_ptr.vmem [resolvable:$false] %s994_s3 }
  0x99   : > { %s996_s4 = scalar_lea.vmem %s995_s3, 512  ;;  %p997_p4 = scmp.lt.s32.totalorder %s1627_s7, %s995_s3 }
  0x9a   : > { %p992_p12 = pnand %p990_p6, %p976_p8  ;;  %p998_p11 = scmp.lt.s32.totalorder %s996_s4, %s989_s1 }
  0x9c   : > { %p993_p5 = pneg %p992_p12  ;;  %p999_p13 = por %p998_p11, %p997_p4 }
  0x9e   : > { %p1000_p7 = pnand %p999_p13, %p993_p5 }
  0xa0   : > { %1003 = shalt.err (!%p1000_p7)
}
  0xa1   : > { %s2083_s9 = smov 8   ;;  %s2084_s12 = smov 128  }
  0xa2   : > { %734 = dma.hbm_to_vmem [thread:$0]  (!%p1623_p2), %s1646_s24, 256, %s1627_s7, %s1654_s19, %s2084_s12, %s2084_s12, %s2083_s9  }
  0xa3   : > { %s137_s26 = ssub.s32 %s1633_s27, %s1635_s15  ;;  %p2085_p4 = scmp.eq.s32.totalorder %s1436_s30, 0 }
  0xa4   : > { %p2086_p5 = scmp.ne.s32.totalorder %s1224_s17, %s1220_s16  ;;  %s138_s8 = sor.u32 %s137_s26, %s1464_s5 }
  0xa5   : > { %s301_s1 = sand.u32 1, %s1228_s18   ;;  %p139_p8 = scmp.eq.s32.totalorder %s138_s8, 0 }
  0xa6   : > { %p1692_p10 = por %p2086_p5, %p2085_p4  ;;  %s681_s0 = sshll.u32 %s301_s1, 4 }
  0xa7   : > { %p2089_p0 = scmp.lt.s32.totalorder %s1272_s29, 32  ;;  %s2091_s24 = sld [smem:[#allocation32_spill]] }
  0xa8   : > { %s2087_s22 = scalar_select %p1692_p10, 1, 0 }
  0xa9   : > { %p1702_p3 = pnand %p2089_p0, %p1650_p1  ;;  %s2092_s16 = sld [smem:[#allocation33_spill]] }
  0xaa   : > { %2088 = sst [smem:[#allocation51_spill]] %s2087_s22  ;;  %s2094_s27 = sadd.s32 2, %s1447_s6 }
  0xab   : > { %s1709_s15 = scalar_select %p139_p8, %s1228_s18, %s141_s21  }
  0xac   : > { %s717_s7 = scalar_select %p1650_p1, [#allocation3], [#allocation16] }
  0xad   : > { %2093 = sst [smem:[#allocation52_spill]] %s1709_s15  ;;  %s2095_s19 = sld [smem:[#allocation31_spill]] }
  0xae   : > { %s2174_s27 = smov (!%p1650_p1, %s2094_s27), 0  ;;  %p2096_p2 = pmov %p2089_p0 }
  0xaf   : > { %p2097_p9 = pmov %p2089_p0  ;;  %s303_s26 = scalar_lea.vmem [#allocation10], %s681_s0 }
  0xb0   : > { %s2176_s7 = smov (!%p2096_p2, %s717_s7), [#allocation20]  ;;  %s317_s8 = sshll.u32 %s303_s26, 4  ;;  %s1729_s8 = int_to_ptr.vmem [resolvable:$true] %s317_s8 }
  0xb1   : > { %s2178_s27 = smov (!%p2097_p9, %s2174_s27), 0  ;;  %s167_s1 = sadd.s32 3, %s1447_s6 }
  0xb2   : > { %s308_s4 = sld [smem:[%s2176_s7 + %s2178_s27]]  ;;  %s172_s21 = sadd.s32 3, %s1473_s13 }
  0xb3   : > { %s1725_s10 = sld [smem:[#allocation3 + %s167_s1]]  ;;  %s179_s13 = sadd.s32 1, %s2092_s16 }
  0xb4   : > { %s1727_s15 = sld [smem:[#allocation3 + %s172_s21]]  ;;  %p1006_p11 = pneg %p1702_p3 }
  0xb5   : > { %s2098_s0 = sld [smem:[#allocation55_spill]] }
  0xb8   : > { %s684_s28 = sshll.u32 %s308_s4, 1 }
  0xb9   : > { %s314_s18 = sadd.s32 %s684_s28, %s1509_s2 }
  0xba   : > { %s686_s22 = sshll.u32 %s314_s18, 7 }
  0xbb   : > { %s2099_s5 = smov %s2098_s0  ;;  %s1739_s27 = scalar_lea.hbm %s2098_s0, %s686_s22 }
  0xbc   : > { %s1004_s26 = scalar_lea.hbm %s1739_s27, 256  ;;  %s1009_s21 = scalar_lea.hbm %s2099_s5, 8192 }
  0xbd   : > { %p1005_p12 = scmp.ne.s32.totalorder %s1739_s27, %s1004_s26  ;;  %p1010_p4 = scmp.lt.u32.totalorder %s1739_s27, %s2099_s5 }
  0xbe   : > { %p1011_p5 = scmp.lt.u32.totalorder %s1009_s21, %s1004_s26  ;;  %p1013_p0 = scmp.lt.u32.totalorder %s1004_s26, %s1739_s27 }
  0xbf   : > { %p1007_p13 = pnand %p1006_p11, %p1005_p12 }
  0xc0   : > { %p1012_p8 = por %p1011_p5, %p1010_p4 }
  0xc1   : > { %p1008_p7 = pneg %p1007_p13 }
  0xc2   : > { %p1014_p2 = por %p1013_p0, %p1012_p8 }
  0xc4   : > { %p1015_p9 = pnand %p1014_p2, %p1008_p7 }
  0xc6   : > { %1018 = shalt.err (!%p1015_p9)
}
  0xc7   : > { %s1019_s28 = scalar_lea.vmem %s1729_s8, 256  ;;  %s1280_s7 = smov [#allocation10]  }
  0xc8   : > { %p1020_p12 = scmp.ne.s32.totalorder %s1729_s8, %s1019_s28  ;;  %s1024_s0 = sshll.u32 %s1280_s7, 4  ;;  %s1025_s0 = int_to_ptr.vmem [resolvable:$false] %s1024_s0 }
  0xc9   : > { %s1026_s18 = scalar_lea.vmem %s1025_s0, 512  ;;  %p1027_p6 = scmp.lt.s32.totalorder %s1729_s8, %s1025_s0 }
  0xca   : > { %p1022_p13 = pnand %p1020_p12, %p1006_p11  ;;  %p1028_p4 = scmp.lt.s32.totalorder %s1026_s18, %s1019_s28 }
  0xcc   : > { %p1023_p1 = pneg %p1022_p13  ;;  %p1029_p5 = por %p1028_p4, %p1027_p6 }
  0xce   : > { %p1030_p8 = pnand %p1029_p5, %p1023_p1 }
  0xd0   : > { %1033 = shalt.err (!%p1030_p8)
}
  0xd1   : > { %s2100_s26 = sld [smem:[#allocation44_spill]]  ;;  %s175_s3 = ssub.s32 %s1725_s10, %s1727_s15 }
  0xd2   : > { %744 = dma.hbm_to_vmem [thread:$0]  (!%p1702_p3), %s1739_s27, 256, %s1729_s8, %s1554_s11, %s2084_s12, %s2084_s12, %s2083_s9  }
  0xd3   : > { %p2101_p1 = scmp.eq.s32.totalorder %s1436_s30, 0  ;;  %p2102_p6 = scmp.ne.s32.totalorder %s2091_s24, %s2095_s19 }
  0xd4   : > { %p2104_p7 = scmp.eq.s32.totalorder %s1272_s29, 0  ;;  %p2105_p0 = scmp.ne.s32.totalorder %s2092_s16, %s2091_s24 }
  0xd5   : > { %p1778_p11 = por %p2102_p6, %p2101_p1  ;;  %s327_s17 = sand.u32 1, %s2092_s16  }
  0xd6   : > { %p188_p2 = por %p2105_p0, %p2104_p7  ;;  %p2106_p12 = scmp.lt.s32.totalorder %s1272_s29, 32 }
  0xd7   : > { %s2103_s4 = scalar_select %p1778_p11, 1, 0 }
  0xd8   : > { %s176_s21 = sor.u32 %s175_s3, %s2100_s26  ;;  %p1791_p13 = pnand %p2106_p12, %p188_p2 }
  0xd9   : > { %p177_p9 = scmp.eq.s32.totalorder %s176_s21, 0  ;;  %s687_s11 = sshll.u32 %s327_s17, 4 }
  0xda   : > { %s720_s10 = scalar_select %p188_p2, [#allocation3], [#allocation17] }
  0xdb   : > { %s2180_s16 = smov (!%p177_p9, %s2092_s16), %s179_s13  ;;  %s2182_s1 = smov (!%p188_p2, %s167_s1), 0 }
  0xdc   : > { %p2108_p3 = pmov %p2106_p12  ;;  %s331_s15 = scalar_lea.vmem [#allocation11], %s687_s11 }
  0xdd   : > { %s345_s19 = sshll.u32 %s331_s15, 4  ;;  %s2110_s0 = sld [smem:[#allocation56_spill]]  ;;  %s1807_s19 = int_to_ptr.vmem [resolvable:$true] %s345_s19 }
  0xde   : > { %s2184_s10 = smov (!%p2108_p3, %s720_s10), [#allocation21]  ;;  %p2109_p4 = pmov %p2108_p3 }
  0xdf   : > { %s1814_s6 = scalar_lea.sflag [#allocation12], %s327_s17  ;;  %p1036_p8 = pneg %p1791_p13 }
  0xe0   : > { %s2186_s1 = smov (!%p2109_p4, %s2182_s1), 0 }
  0xe1   : > { %s336_s24 = sld [smem:[%s2184_s10 + %s2186_s1]] }
  0xe3   : > { %s2111_s3 = smov %s2110_s0 }
  0xe4   : > { %s1039_s21 = scalar_lea.hbm %s2111_s3, 8192 }
  0xe7   : > { %s690_s8 = sshll.u32 %s336_s24, 1 }
  0xe8   : > { %s342_s27 = sadd.s32 %s690_s8, %s1509_s2 }
  0xe9   : > { %s692_s28 = sshll.u32 %s342_s27, 7 }
  0xea   : > { %s1812_s18 = scalar_lea.hbm %s2110_s0, %s692_s28 }
  0xeb   : > { %s1034_s26 = scalar_lea.hbm %s1812_s18, 256  ;;  %p1040_p7 = scmp.lt.u32.totalorder %s1812_s18, %s2111_s3 }
  0xec   : > { %p1035_p5 = scmp.ne.s32.totalorder %s1812_s18, %s1034_s26  ;;  %p1041_p0 = scmp.lt.u32.totalorder %s1039_s21, %s1034_s26 }
  0xed   : > { %p1043_p9 = scmp.lt.u32.totalorder %s1034_s26, %s1812_s18 }
  0xee   : > { %p1037_p1 = pnand %p1036_p8, %p1035_p5  ;;  %p1042_p2 = por %p1041_p0, %p1040_p7 }
  0xf0   : > { %p1038_p6 = pneg %p1037_p1  ;;  %p1044_p12 = por %p1043_p9, %p1042_p2 }
  0xf2   : > { %p1045_p3 = pnand %p1044_p12, %p1038_p6 }
  0xf4   : > { %1048 = shalt.err (!%p1045_p3)
}
  0xf5   : > { %s1049_s17 = scalar_lea.vmem %s1807_s19, 256  ;;  %s1281_s24 = smov [#allocation11]  }
  0xf6   : > { %p1050_p4 = scmp.ne.s32.totalorder %s1807_s19, %s1049_s17  ;;  %s1054_s15 = sshll.u32 %s1281_s24, 4  ;;  %s1055_s15 = int_to_ptr.vmem [resolvable:$false] %s1054_s15 }
  0xf7   : > { %s1056_s8 = scalar_lea.vmem %s1055_s15, 512  ;;  %p1057_p11 = scmp.lt.s32.totalorder %s1807_s19, %s1055_s15 }
  0xf8   : > { %p1052_p5 = pnand %p1050_p4, %p1036_p8  ;;  %p1058_p7 = scmp.lt.s32.totalorder %s1056_s8, %s1049_s17 }
  0xfa   : > { %p1053_p1 = pneg %p1052_p5  ;;  %p1059_p0 = por %p1058_p7, %p1057_p11 }
  0xfc   : > { %p1060_p2 = pnand %p1059_p0, %p1053_p1 }
  0xfe   : > { %1063 = shalt.err (!%p1060_p2)
}
  0xff   : > { %749 = dma.hbm_to_vmem [thread:$0]  (!%p1791_p13), %s1812_s18, 256, %s1807_s19, %s1814_s6, %s2084_s12, %s2084_s12, %s2083_s9  }
 0x100   : > { %p2112_p8 = scmp.ne.s32.totalorder %s2068_s25, 0 }
 0x101   : > { %s359_s27 = sand.u32 (!%p2112_p8), 1, %s1248_s23   ;;  %p2113_p11 = scmp.ne.s32.totalorder (!%p2112_p8), %s2073_s14, 0 }
 0x102   : > { %357 = sbr.rel (%p2112_p8) target bundleno = 329 (0x149), region = 36  ;;  %s1848_s28 = sshll.u32 (!%p2112_p8), %s359_s27, 4 }
 0x103   : > { %s360_s13 = scalar_lea.sflag (!%p2112_p8), [#allocation6], %s359_s27  ;;  %s363_s7 = scalar_lea.vmem (!%p2112_p8), [#allocation5], %s1848_s28 }
 0x109   : > { %1175 = dma.done.wait (%p2113_p11), %s360_s13, 256  }
 0x10a   : > { %1177 = vsyncadd (%p2113_p11), %s360_s13, 4294967040  ;;  %s2114_s22 = sld [smem:[#allocation45_spill]]  ;;  %s368_s9 = sand.u32 1, %s1436_s30  }
 0x10b   : > { %s370_s12 = sand.u32 1, %s1236_s20   ;;  %s369_s19 = scalar_lea.sflag [#allocation9], %s368_s9 }
 0x10c   : > { %s1857_s25 = sshll.u32 %s370_s12, 4 }
 0x10d   : > { %s372_s0 = scalar_lea.vmem [#allocation8], %s1857_s25 }
 0x110   : > { %p2115_p13 = scmp.ne.s32.totalorder %s2114_s22, 0 }
 0x112   : > { %1179 = dma.done.wait (%p2115_p13), %s369_s19, 256  }
 0x113   : > { %1181 = vsyncadd (%p2115_p13), %s369_s19, 4294967040  ;;  %s2116_s18 = sld [smem:[#allocation34_spill]] }
 0x119   : > { %s379_s26 = sand.u32 1, %s2116_s18  }
 0x11a   : > { %s696_s14 = sshll.u32 %s379_s26, 4 }
 0x11b   : > { %s381_s2 = scalar_lea.vmem [#allocation10], %s696_s14 }
 0x11c   : > { %1183 = dma.done.wait (%p1692_p10), %s369_s19, 256  }
 0x11d   : > { %1185 = vsyncadd (%p1692_p10), %s369_s19, 4294967040  ;;  %s2118_s30 = sld [smem:[#allocation32_spill]]  ;;  %p2119_p6 = scmp.ne.s32.totalorder %s2103_s4, 0 }
 0x123   : > { %s386_s1 = sand.u32 1, %s2118_s30  }
 0x124   : > { %s697_s21 = sshll.u32 %s386_s1, 4  ;;  %s387_s11 = scalar_lea.sflag [#allocation12], %s386_s1 }
 0x125   : > { %s390_s10 = scalar_lea.vmem [#allocation11], %s697_s21 }
 0x126   : > { %1187 = dma.done.wait (%p2119_p6), %s387_s11, 256  }
 0x127   : > { %1189 = vsyncadd (%p2119_p6), %s387_s11, 4294967040  ;;  %s2120_s17 = sld [smem:[#allocation29_spill]]  ;;  %s2121_s24 = sld [smem:[#allocation38_spill]]  ;;  %v449_v0 = vld [vmem:[%s363_s7] sm:$0xff]  ;;  %v450_v1 = vld [vmem:[%s363_s7 + $0x8] sm:$0xff] }
 0x128   : > { %s2122_s15 = sld [smem:[#allocation39_spill]]  ;;  %v453_v2 = vld [vmem:[%s372_s0] sm:$0xff]  ;;  %s2123_s26 = sld [smem:[#allocation57_spill]]  ;;  %v454_v3 = vld [vmem:[%s372_s0 + $0x8] sm:$0xff] }
 0x129   : > { %s2125_s1 = sld [smem:[#allocation47_spill]]  ;;  %v458_v4 = vld [vmem:[%s381_s2] sm:$0xff]  ;;  %v459_v5 = vld [vmem:[%s381_s2 + $0x8] sm:$0xff]  ;;  %s1282_s21 = smov [#allocation13]  }
 0x12a   : > { %v463_v6 = vld [vmem:[%s390_s10] sm:$0xff]  ;;  %v464_v7 = vld [vmem:[%s390_s10 + $0x8] sm:$0xff]  ;;  %s1068_s25 = sshll.u32 %s1282_s21, 4  ;;  %s1069_s25 = int_to_ptr.vmem [resolvable:$false] %s1068_s25 }
 0x12b   : > { %s1070_s0 = scalar_lea.vmem %s1069_s25, 2048 }
 0x12d   : > { %s427_s8 = sand.u32 1, %s2120_s17   ;;  %s706_s27 = sshll.u32 %s2121_s24, 3 }
 0x12e   : > { %s698_s13 = sshll.u32 %s427_s8, 6  ;;  %s707_s22 = sshll.u32 %s2122_s15, 7 }
 0x12f   : > { %s481_s9 = sadd.s32 %s707_s22, %s706_s27  ;;  %s429_s12 = scalar_lea.vmem [#allocation13], %s698_s13 }
 0x130   : > { %s484_s19 = sshll.u32 %s429_s12, 4  ;;  %s708_s18 = sshll.u32 %s481_s9, 7  ;;  %451 = vst [vmem:[%s429_s12] sm:$0xff] %v449_v0  ;;  %452 = vst [vmem:[%s429_s12 + $0x8] sm:$0xff] %v450_v1  ;;  %s1879_s19 = int_to_ptr.vmem [resolvable:$true] %s484_s19 }
 0x131   : > { %s2124_s30 = smov %s2123_s26  ;;  %s1888_s14 = scalar_lea.hbm %s2123_s26, %s708_s18  ;;  %699 = vst [vmem:[%s429_s12 + $0x10] sm:$0xff] %v453_v2  ;;  %700 = vst [vmem:[%s429_s12 + $0x18] sm:$0xff] %v454_v3 }
 0x132   : > { %701 = vst [vmem:[%s429_s12 + $0x20] sm:$0xff] %v458_v4  ;;  %702 = vst [vmem:[%s429_s12 + $0x28] sm:$0xff] %v459_v5  ;;  %s1892_s28 = scalar_lea.sflag [#allocation7], %s427_s8  ;;  %s1064_s7 = scalar_lea.vmem %s1879_s19, 1024 }
 0x133   : > { %703 = vst [vmem:[%s429_s12 + $0x30] sm:$0xff] %v463_v6  ;;  %704 = vst [vmem:[%s429_s12 + $0x38] sm:$0xff] %v464_v7  ;;  %p1065_p10 = scmp.ne.s32.totalorder %s1879_s19, %s1064_s7  ;;  %p2126_p9 = scmp.ne.s32.totalorder %s2125_s1, 0 }
 0x134   : > { %p1071_p4 = scmp.lt.s32.totalorder %s1879_s19, %s1069_s25  ;;  %p1072_p5 = scmp.lt.s32.totalorder %s1070_s0, %s1064_s7 }
 0x135   : > { %p1066_p12 = pnand %p1065_p10, %p2126_p9 }
 0x136   : > { %p1073_p1 = por %p1072_p5, %p1071_p4 }
 0x137   : > { %p1067_p3 = pneg %p1066_p12 }
 0x139   : > { %p1074_p7 = pnand %p1073_p1, %p1067_p3 }
 0x13b   : > { %1077 = shalt.err (!%p1074_p7)
}
 0x13c   : > { %s1078_s2 = scalar_lea.hbm %s1888_s14, 1024  ;;  %s1082_s17 = scalar_lea.hbm %s2124_s30, 32768 }
 0x13d   : > { %p1079_p0 = scmp.ne.s32.totalorder %s1888_s14, %s1078_s2  ;;  %p1083_p11 = scmp.lt.u32.totalorder %s1888_s14, %s2124_s30 }
 0x13e   : > { %p1084_p13 = scmp.lt.u32.totalorder %s1082_s17, %s1078_s2  ;;  %p1086_p10 = scmp.lt.u32.totalorder %s1078_s2, %s1888_s14 }
 0x13f   : > { %p1080_p2 = pnand %p1079_p0, %p2126_p9 }
 0x140   : > { %p1085_p6 = por %p1084_p13, %p1083_p11 }
 0x141   : > { %p1081_p8 = pneg %p1080_p2 }
 0x142   : > { %p1087_p12 = por %p1086_p10, %p1085_p6 }
 0x144   : > { %p1088_p3 = pnand %p1087_p12, %p1081_p8 }
 0x146   : > { %1091 = shalt.err (!%p1088_p3)
}
 0x147   : > { %s1283_s8 = smov 128   ;;  %s1284_s27 = smov 8  }
 0x148   : > { %727 = dma.vmem_to_hbm [thread:$0]  (%p2126_p9), %s1879_s19, 1024, %s1888_s14, %s1892_s28, %s1283_s8, %s1283_s8, %s1284_s27  }
 0x149 PF: > { %s2127_s13 = sld [smem:[#allocation28_spill]]  ;;  %s2128_s22 = sld [smem:[#allocation48_spill]] }
 0x14a   : > { %p755_p4 = scmp.ge.s32.totalorder %s1272_s29, 2 }
 0x14f   : > { %s499_s9 = sand.u32 1, %s2127_s13   ;;  %p2129_p5 = scmp.ne.s32.totalorder %s2128_s22, 0 }
 0x150   : > { %s500_s12 = scalar_lea.sflag [#allocation7], %s499_s9 }
 0x151   : > { %p751_p1 = pnand %p755_p4, %p2129_p5 }
 0x153   : > { %1191 = dma.done.wait (!%p751_p1), %s500_s12, 1024  }
 0x154   : > { %1193 = vsyncadd (!%p751_p1), %s500_s12, 4294966272  ;;  %s36_s29 = sadd.s32 1, %s1272_s29   ;;  %s2131_s0 = sld [smem:[#allocation29_spill]] }
 0x155   : > { %p1921_p7 = scmp.ge.s32.totalorder %s36_s29, 34   ;;  %s2132_s1 = sld [smem:[#allocation30_spill]] }
 0x156   : > { %s2133_s12 = sld [smem:[#allocation46_spill]]  ;;  %s2134_s13 = sld [smem:[#allocation32_spill]] }
 0x157   : > { %s2135_s14 = sld [smem:[#allocation33_spill]]  ;;  %s2136_s19 = sld [smem:[#allocation34_spill]] }
 0x158   : > { %s2137_s17 = sld [smem:[#allocation35_spill]]  ;;  %s2138_s4 = sld [smem:[#allocation52_spill]] }
 0x159   : > { %s2139_s6 = sld [smem:[#allocation36_spill]]  ;;  %s2140_s21 = sld [smem:[#allocation49_spill]] }
 0x15a   : > { %s2141_s26 = sld [smem:[#allocation37_spill]]  ;;  %s2142_s24 = sld [smem:[#allocation50_spill]] }
 0x15b   : > { %s2143_s25 = sld [smem:[#allocation40_spill]]  ;;  %s2144_s28 = sld [smem:[#allocation41_spill]] }
 0x15c   : > { %s2145_s27 = sld [smem:[#allocation42_spill]]  ;;  %s2146_s7 = sld [smem:[#allocation43_spill]] }
 0x15d   : > { %s2148_s15 = smov %s2180_s16  ;;  %s2149_s16 = smov %s2136_s19 }
 0x15e   : > { %s2150_s18 = smov %s2138_s4  ;;  %s2151_s19 = smov %s1236_s20 }
 0x15f   : > { %s2152_s20 = smov %s2139_s6  ;;  %s2153_s22 = smov %s1248_s23 }
 0x160   : > { %s2154_s23 = smov %s2141_s26  ;;  %35 = sbr.rel (!%p1921_p7) target bundleno = 40 (0x28), region = 121 }
 0x161   : > { %s2155_s26 = smov %s2144_s28 }
 0x162   : > { %s2156_s28 = smov %s2146_s7 }
 0x167   :  { %505 = vsyncpa [#allocation6], 1 }
 0x168   :  { %507 = vsyncpa [#allocation6 + $0x1], 1 }
 0x169   :  { %508 = vsyncpa [#allocation9], 1 }
 0x16a   :  { %510 = vsyncpa [#allocation9 + $0x1], 1 }
 0x16b   :  { %511 = vsyncpa [#allocation12], 1 }
 0x16c   :  { %513 = vsyncpa [#allocation12 + $0x1], 1 }
 0x16d   :  { %514 = vsyncpa [#allocation7], 1 }
 0x16e   :  { %516 = vsyncpa [#allocation7 + $0x1], 1 }

</bundles_post_ra>
